<compile_context>
chip_gen: v5e
topology: v5e:2x2
jax: 0.10.0
libtpu: 0.0.40
codegen_flags: <defaults>
</compile_context>

<pallas_src>
import jax
import jax.numpy as jnp
from jax.experimental import pallas as pl
from jax.experimental.pallas import tpu as pltpu

IMAGENET_MEAN = (0.485, 0.456, 0.406)
IMAGENET_STD = (0.229, 0.224, 0.225)

# Fused form of (x/255 - mean)/std  ==  x * scale + bias  (per channel, kept as Python
# floats so they become inlined scalar literals -- no captured array constants).
_SCALE = tuple(1.0 / (255.0 * s) for s in IMAGENET_STD)
_BIAS = tuple(-m / s for m, s in zip(IMAGENET_MEAN, IMAGENET_STD))

# Dense-layout path: block (3, S, 128). S_MAX=2048 -> ~0.75 MiB u8 in + 3 MiB f32 out per
# block, ~7.5 MiB double-buffered: fits default scoped VMEM on v5e/v6e/v7x.
_ROWS_TILE_MAX = 2048
# Ragged fallback path: block (3, TILE) on the flat (3, H*W) array. Sublanes pad 3->8
# (f32) / 3->32 (u8), so 64K lanes ~= 8 MiB double-buffered.
_FLAT_TILE_MAX = 64 * 1024


def _round_up(x: int, m: int) -> int:
    return ((x + m - 1) // m) * m


def _norm_kernel(x_ref, o_ref):
    """x_ref: uint8 block, o_ref: float32 block; channel is axis 0 (size 3)."""
    full = (slice(None),) * (len(x_ref.shape) - 1)
    for c in range(3):  # unrolled; scale/bias are scalar immediates per channel
        idx = (pl.ds(c, 1),) + full
        o_ref[idx] = x_ref[idx].astype(jnp.float32) * _SCALE[c] + _BIAS[c]


def my_transform_cls(img_hwc_u8: jax.Array) -> jax.Array:
    """(H, W, 3) uint8 -> (1, 3, H, W) float32  (ToTensor + Normalize + unsqueeze)."""
    H, W, C = img_hwc_u8.shape
    assert C == 3
    hw = H * W

    # ToTensor's layout change only (still uint8, 3 B/px): HWC -> CHW.
    x = jnp.transpose(img_hwc_u8, (2, 0, 1))

    compiler_params = pltpu.CompilerParams(
        dimension_semantics=("parallel",),  # spatial tiles are independent (v7x megacore)
        # Allow XLA to fold the cheap uint8 transpose/reshape into this kernel's input
        # DMA instead of materializing a transposed copy in HBM.
        allow_input_fusion=[True],
    )
    # TODO(synk): if profiling shows the transpose is still materialized, pass the raw
    # (H, W*3) view instead and de-interleave channels in-kernel with stride-3 lane slices.

    if hw % 128 == 0:
        # Dense lane-major layout (3, rows, 128): no sublane-padding waste, lane-dense
        # unmasked stores, no pad and no output slice.
        rows = hw // 128
        if rows <= 64:
            s = rows  # one block; block dim == full dim is always legal
        else:
            # >= ~4 grid steps (v7x megacore + DMA/compute overlap); multiple of 32 so
            # the uint8 tile is sublane-dense too.
            s = _round_up(pl.cdiv(rows, 4), 32)
            s = min(s, _ROWS_TILE_MAX, _round_up(rows, 32))
        out = pl.pallas_call(
            _norm_kernel,
            out_shape=jax.ShapeDtypeStruct((C, rows, 128), jnp.float32),
            grid=(pl.cdiv(rows, s),),
            in_specs=[pl.BlockSpec((C, s, 128), lambda t: (0, t, 0))],
            out_specs=pl.BlockSpec((C, s, 128), lambda t: (0, t, 0)),
            compiler_params=compiler_params,
        )(x.reshape(C, rows, 128))
    else:
        # Ragged fallback (H*W not a multiple of 128): run the grid directly over the
        # unpadded flat array; Pallas masks out-of-bounds writes in the last block.
        if hw <= 128:
            tile = hw  # single full block (== full dim, legal even if not 128-aligned)
        else:
            tile = min(_FLAT_TILE_MAX, max(128, _round_up(pl.cdiv(hw, 4), 128)))
        out = pl.pallas_call(
            _norm_kernel,
            out_shape=jax.ShapeDtypeStruct((C, hw), jnp.float32),
            grid=(pl.cdiv(hw, tile),),
            in_specs=[pl.BlockSpec((C, tile), lambda t: (0, t))],
            out_specs=pl.BlockSpec((C, tile), lambda t: (0, t)),
            compiler_params=compiler_params,
        )(x.reshape(C, hw))

    # unsqueeze(0): add batch dim.
    return out.reshape(C, H, W)[None]


def _reference(img_hwc_u8: jax.Array) -> jax.Array:
    x = jnp.transpose(img_hwc_u8, (2, 0, 1)).astype(jnp.float32) / 255.0
    mean = jnp.asarray(IMAGENET_MEAN, jnp.float32)[:, None, None]
    std = jnp.asarray(IMAGENET_STD, jnp.float32)[:, None, None]
    return ((x - mean) / std)[None]


if __name__ == "__main__":
    key = jax.random.PRNGKey(0)
    # (16,16): aligned path, grid=1. (96,96): aligned path, grid=3 incl. ragged last
    # block. (15,9): H*W=135 not a multiple of 128 -> flat fallback path, grid=2.
    shapes = [(16, 16), (96, 96), (15, 9)]
    keys = jax.random.split(key, len(shapes))

    for (H, W), k in zip(shapes, keys):
        img = jax.random.randint(k, (H, W, 3), 0, 256, dtype=jnp.int32).astype(jnp.uint8)
        out = my_transform_cls(img)
        jax.block_until_ready(out)

        ref = _reference(img)
        assert out.shape == (1, 3, H, W), (out.shape, (1, 3, H, W))
        assert out.dtype == jnp.float32
        err = float(jnp.max(jnp.abs(out - ref)))
        # Fused scale+bias differs from (x/255 - m)/s only at ~1e-7.
        assert err < 1e-5, err

    print("KERNEL_OK")
</pallas_src>

<mosaic_0001>
module attributes {stable_mosaic.version = 11 : i64} {
  func.func @_norm_kernel(%arg0: i32, %arg1: memref<3x2x128xi8, #tpu.memory_space<vmem>>, %arg2: memref<3x2x128xf32, #tpu.memory_space<vmem>>) attributes {dimension_semantics = [#tpu.dimension_semantics<parallel>], iteration_bounds = array<i64: 1>, scalar_prefetch = 0 : i64, scratch_operands = 0 : i64, tpu.core_type = #tpu.core_type<tc>, window_params = [{transform_indices = @transform_0, window_bounds = array<i64: 3, 2, 128>}, {transform_indices = @transform_1, window_bounds = array<i64: 3, 2, 128>}]} {
    %c0 = arith.constant 0 : index
    %c0_0 = arith.constant 0 : index
    %c0_1 = arith.constant 0 : index
    %0 = vector.load %arg1[%c0, %c0_0, %c0_1] : memref<3x2x128xi8, #tpu.memory_space<vmem>>, vector<1x2x128xi8>
    %1 = arith.uitofp %0 : vector<1x2x128xi8> to vector<1x2x128xf32>
    %cst = arith.constant 0.0171247534 : f32
    %2 = vector.broadcast %cst : f32 to vector<1x2x128xf32>
    %3 = arith.mulf %1, %2 : vector<1x2x128xf32>
    %cst_2 = arith.constant -2.11790395 : f32
    %4 = vector.broadcast %cst_2 : f32 to vector<1x2x128xf32>
    %5 = arith.addf %3, %4 : vector<1x2x128xf32>
    %c0_3 = arith.constant 0 : index
    %c0_4 = arith.constant 0 : index
    %c0_5 = arith.constant 0 : index
    %6 = vector.load %arg2[%c0_3, %c0_4, %c0_5] : memref<3x2x128xf32, #tpu.memory_space<vmem>>, vector<1x2x128xf32>
    tpu.vector_store %arg2[%c0_3, %c0_4, %c0_5], %5 {strides = array<i32>} : memref<3x2x128xf32, #tpu.memory_space<vmem>>, vector<1x2x128xf32>,
    %c1 = arith.constant 1 : index
    %c0_6 = arith.constant 0 : index
    %c0_7 = arith.constant 0 : index
    %7 = vector.load %arg1[%c1, %c0_6, %c0_7] : memref<3x2x128xi8, #tpu.memory_space<vmem>>, vector<1x2x128xi8>
    %8 = arith.uitofp %7 : vector<1x2x128xi8> to vector<1x2x128xf32>
    %cst_8 = arith.constant 0.0175070036 : f32
    %9 = vector.broadcast %cst_8 : f32 to vector<1x2x128xf32>
    %10 = arith.mulf %8, %9 : vector<1x2x128xf32>
    %cst_9 = arith.constant -2.03571439 : f32
    %11 = vector.broadcast %cst_9 : f32 to vector<1x2x128xf32>
    %12 = arith.addf %10, %11 : vector<1x2x128xf32>
    %c1_10 = arith.constant 1 : index
    %c0_11 = arith.constant 0 : index
    %c0_12 = arith.constant 0 : index
    %13 = vector.load %arg2[%c1_10, %c0_11, %c0_12] : memref<3x2x128xf32, #tpu.memory_space<vmem>>, vector<1x2x128xf32>
    tpu.vector_store %arg2[%c1_10, %c0_11, %c0_12], %12 {strides = array<i32>} : memref<3x2x128xf32, #tpu.memory_space<vmem>>, vector<1x2x128xf32>,
    %c2 = arith.constant 2 : index
    %c0_13 = arith.constant 0 : index
    %c0_14 = arith.constant 0 : index
    %14 = vector.load %arg1[%c2, %c0_13, %c0_14] : memref<3x2x128xi8, #tpu.memory_space<vmem>>, vector<1x2x128xi8>
    %15 = arith.uitofp %14 : vector<1x2x128xi8> to vector<1x2x128xf32>
    %cst_15 = arith.constant 0.0174291935 : f32
    %16 = vector.broadcast %cst_15 : f32 to vector<1x2x128xf32>
    %17 = arith.mulf %15, %16 : vector<1x2x128xf32>
    %cst_16 = arith.constant -1.80444443 : f32
    %18 = vector.broadcast %cst_16 : f32 to vector<1x2x128xf32>
    %19 = arith.addf %17, %18 : vector<1x2x128xf32>
    %c2_17 = arith.constant 2 : index
    %c0_18 = arith.constant 0 : index
    %c0_19 = arith.constant 0 : index
    %20 = vector.load %arg2[%c2_17, %c0_18, %c0_19] : memref<3x2x128xf32, #tpu.memory_space<vmem>>, vector<1x2x128xf32>
    tpu.vector_store %arg2[%c2_17, %c0_18, %c0_19], %19 {strides = array<i32>} : memref<3x2x128xf32, #tpu.memory_space<vmem>>, vector<1x2x128xf32>,
    return
  }
  func.func @transform_0(%arg0: i32) -> (i32, i32, i32) {
    %c0_i32 = arith.constant 0 : i32
    %c0_i32_0 = arith.constant 0 : i32
    %c0_i32_1 = arith.constant 0 : i32
    return %c0_i32, %arg0, %c0_i32_0 : i32, i32, i32
  }
  func.func @transform_1(%arg0: i32) -> (i32, i32, i32) {
    %c0_i32 = arith.constant 0 : i32
    %c0_i32_0 = arith.constant 0 : i32
    %c0_i32_1 = arith.constant 0 : i32
    return %c0_i32, %arg0, %c0_i32_0 : i32, i32, i32
  }
}

</mosaic_0001>

<bundles_post_ra>
// kernel: tpu_custom_call.1
= control target key start
LH: loop header
LB: loop body
LE: loop exit
PB: predicated region body
PF: predicated region fallthrough
CT: control target
= control target key end

     0   :  { %s108_s0 = inlined_call_operand.vmem [shape: u8[3,2,128], index: 0, kind: input, shape index: {}]   ;;  %s109_s1 = inlined_call_operand.hbm [shape: f32[3,2,128], index: 1, kind: output, shape index: {}]  }
   0x1   :  { %v9_v0 = vld [vmem:[%s108_s0] sm:$0x1]  ;;  %v52_v1 = vld [vmem:[%s108_s0 + $0x1] sm:$0x1]  ;;  %v53_v2 = vld [vmem:[%s108_s0 + $0x2] sm:$0x1] }
   0x2   :  { %v10_v3 = vunpack.c.0.s8 %v9_v0  ;;  %v18_v4 = vunpack.c.0.s8 %v52_v1  ;;  %v27_v5 = vunpack.c.0.s8 %v53_v2 }
   0x3   :  { %6 = vsyncpa [#allocation3], 0  ;;  %s83_s12 = smov [#allocation2]   ;;  %s40_s16 = sshll.u32 %s109_s1, 4  ;;  %s41_s16 = int_to_ptr.hbm [resolvable:$true] %s40_s16 }
   0x4   :  { %v11_v6 = vand.u32 255, %v10_v3  ;;  %v19_v7 = vand.u32 255, %v18_v4  ;;  %v28_v8 = vand.u32 255, %v27_v5  ;;  %s38_s13 = sshll.u32 %s83_s12, 4  ;;  %s84_s0 = smov 32   ;;  %s39_s13 = int_to_ptr.vmem [resolvable:$true] %s38_s13 }
   0x5   :  { %s85_s17 = smov 2  }
   0x6   :  { %v12_v9 = vcvt.s32.f32 %v11_v6  ;;  %v20_v10 = vcvt.s32.f32 %v19_v7  ;;  %v29_v11 = vcvt.s32.f32 %v28_v8 }
   0x8   :  { %v13_v12 = vmul.f32 0.017124753, %v12_v9  ;;  %v21_v13 = vmul.f32 0.017507004, %v20_v10  ;;  %v30_v14 = vmul.f32 0.017429193, %v29_v11 }
   0xa   :  { %v14_v15 = vadd.f32 -2.117904, %v13_v12  ;;  %v22_v16 = vadd.f32 -2.0357144, %v21_v13  ;;  %v31_v17 = vadd.f32 -1.8044444, %v30_v14 }
   0xc   :  { %15 = vst [vmem:[#allocation2] sm:$0x3] %v14_v15 }
   0xd   :  { %24 = vst [vmem:[#allocation2 + $0x2] sm:$0x3] %v22_v16 }
   0xe   :  { %33 = vst [vmem:[#allocation2 + $0x4] sm:$0x3] %v31_v17 }
   0xf   :  { %46 = dma.vmem_to_hbm [thread:$0]  %s39_s13, 96, %s41_s16, [#allocation3], %s84_s0, %s84_s0, %s85_s17  }
  0x10   :  { %81 = dma.done.wait [#allocation3], 96  }
  0x11   :  { %82 = vsyncadd [#allocation3], 4294967200 }
  0x12   :  { %51 = vsyncpa [#allocation3], 1 }

</bundles_post_ra>
